<compile_context>
chip_gen: v6e
topology: v6e:2x2x1
jax: 0.10.0
libtpu: 0.0.40
codegen_flags: <defaults>
</compile_context>

<pallas_src>
import math

import jax
import jax.numpy as jnp
from jax.experimental import pallas as pl
from jax.experimental.pallas import tpu as pltpu


# ----------------------------------------------------------------------------
# Kernel body: one lane-dense MXU matmul + f32 bias add per batch tile.
# ----------------------------------------------------------------------------
def fused_encoder_kernel(x_ref, w_ref, b_ref, o_ref):
    # In-kernel cast of the f32 x tile to the compute dtype (no-op for f32);
    # rides the VPU and is hidden under the x-tile DMA.
    x = x_ref[...].astype(w_ref.dtype)
    acc = jnp.dot(x, w_ref[...], preferred_element_type=jnp.float32)
    o_ref[...] = (acc + b_ref[...]).astype(o_ref.dtype)


# ----------------------------------------------------------------------------
# One-time preparation helpers (run at construction time, NOT per call).
# ----------------------------------------------------------------------------
def _fold_affine_chain(params):
    """Fold y = (((x@W1+b1)@W2+b2)...) into a single y = x @ W_f + b_f (f32)."""
    w_f, b_f = params[0]
    w_f = w_f.astype(jnp.float32)
    b_f = b_f.astype(jnp.float32).reshape(1, -1)
    for (w, b) in params[1:]:
        w = w.astype(jnp.float32)
        b = b.astype(jnp.float32).reshape(1, -1)
        w_f = w_f @ w
        b_f = b_f @ w + b
    return w_f, b_f


def _cdiv(a, b):
    return -(-a // b)


def _num_tensorcores():
    """TensorCores per chip: v7x has 2; v5e/v6e (and older) have 1."""
    try:
        kind = jax.devices()[0].device_kind.lower()
    except Exception:
        return 1
    return 2 if "v7" in kind else 1


def _target_lanes():
    """Packed lane width: fill the MXU (256x256 on v6e/v7x, 128x128 elsewhere)."""
    try:
        kind = jax.devices()[0].device_kind.lower()
    except Exception:
        return 128
    return 256 if ("v6" in kind or "v7" in kind) else 128


def make_encoder(params, *, compute_dtype=jnp.bfloat16, max_rows_per_tile=2048):
    """Fold the 6-layer affine chain once and return a jitted forward(x)."""
    H = params[0][0].shape[0]

    # 1) Collapse the purely-linear 6-layer chain into one affine map (once).
    w_f, b_f = _fold_affine_chain(params)                 # (H, H), (1, H) f32

    # 2) Lane packing: fold `pack` batch rows into one lane-dense row with a
    #    block-diagonal expanded weight sized to fill this chip's MXU.
    lanes = _target_lanes()
    if H < lanes and lanes % H == 0:
        pack = lanes // H
    elif H < 128 and 128 % H == 0:
        pack = 128 // H
    else:
        pack = 1
    L = pack * H
    if pack > 1:
        w_big = jnp.kron(jnp.eye(pack, dtype=jnp.float32), w_f)   # (L, L)
        b_big = jnp.tile(b_f, (1, pack))                          # (1, L)
    else:
        w_big, b_big = w_f, b_f
    w_big = jax.device_put(w_big.astype(compute_dtype))
    b_big = jax.device_put(b_big.astype(jnp.float32))     # bias add stays f32
    w_itemsize = int(jnp.dtype(compute_dtype).itemsize)

    num_cores = _num_tensorcores()

    @jax.jit
    def forward(x):
        B, Hx = x.shape
        assert Hx == H, "input feature dim must equal hidden_dim"
        out_dtype = x.dtype

        # --- generation-aware tile / grid selection (static under jit) ------
        R = _cdiv(B, pack)                       # packed rows needed
        # Single big step on 1-TC chips (no per-step overhead); >= 2 steps per
        # core on 2-TC v7x so the input double-buffer pipeline stays alive.
        min_steps = 1 if num_cores == 1 else 2 * num_cores
        row_tile = min(max_rows_per_tile, _cdiv(R, min_steps))
        row_tile = max(8, ((row_tile + 7) // 8) * 8)       # sublane multiple of 8
        steps = _cdiv(R, row_tile)
        R_pad = steps * row_tile
        B_pad = R_pad * pack

        # One pad (only when ragged) covers both B % pack != 0 and partial
        # tiles, so block shapes always satisfy the (8, 128) constraint.
        if B_pad != B:
            x = jnp.pad(x, ((0, B_pad - B), (0, 0)))
        x_packed = x.reshape(R_pad, L)                     # row-major: free

        cost = pl.CostEstimate(
            flops=2 * R_pad * L * L,
            transcendentals=0,
            bytes_accessed=2 * R_pad * L * 4 + L * L * w_itemsize + L * 4,
        )

        out = pl.pallas_call(
            fused_encoder_kernel,
            out_shape=jax.ShapeDtypeStruct((R_pad, L), out_dtype),
            grid_spec=pltpu.PrefetchScalarGridSpec(
                num_scalar_prefetch=0,
                grid=(steps,),
                in_specs=[
                    pl.BlockSpec((row_tile, L), lambda i: (i, 0)),   # x tile
                    # TODO(synk): for large-H configs on v7x (64 MiB VMEM),
                    # switch these constant-index specs to
                    # pipeline_mode=pl.Buffered(1) and K/N-tile the weight
                    # with an accumulator instead of keeping it fully resident.
                    pl.BlockSpec((L, L), lambda i: (0, 0)),          # fused W
                    pl.BlockSpec((1, L), lambda i: (0, 0)),          # fused b
                ],
                out_specs=pl.BlockSpec((row_tile, L), lambda i: (i, 0)),
            ),
            compiler_params=pltpu.CompilerParams(
                dimension_semantics=("parallel",),
                vmem_limit_bytes=32 * 1024 * 1024,
            ),
            cost_estimate=cost,
        )(x_packed, w_big, b_big)

        out = out.reshape(B_pad, H)
        if B_pad != B:
            out = out[:B]
        return out

    return forward


# ----------------------------------------------------------------------------
# Init / reference (mirror the PyTorch module).
# ----------------------------------------------------------------------------
def init_linear(key, in_features, out_features):
    # Matches torch.nn.Linear default init: U(-1/sqrt(in), 1/sqrt(in)).
    kw, kb = jax.random.split(key)
    bound = 1.0 / math.sqrt(in_features)
    w = jax.random.uniform(kw, (in_features, out_features), jnp.float32,
                           minval=-bound, maxval=bound)
    b = jax.random.uniform(kb, (1, out_features), jnp.float32,
                           minval=-bound, maxval=bound)
    return w, b


def reference_forward(x, params):
    # Pure-JAX reference: the literal 6-layer chain of the PyTorch module.
    h = x
    for (w, b) in params:
        h = h @ w + b
    return h


if __name__ == "__main__":
    hidden_dim = 32
    batch = 512

    key = jax.random.PRNGKey(0)
    keys = jax.random.split(key, 7)

    # linear1: H -> 4H, 4H -> H, H -> H ; linear3: H -> H (x3)
    dims = [(hidden_dim, 4 * hidden_dim),
            (4 * hidden_dim, hidden_dim),
            (hidden_dim, hidden_dim),
            (hidden_dim, hidden_dim),
            (hidden_dim, hidden_dim),
            (hidden_dim, hidden_dim)]
    params = [init_linear(k, i, o) for k, (i, o) in zip(keys[:6], dims)]

    x = jax.random.normal(keys[6], (batch, hidden_dim), jnp.float32)
    ref = reference_forward(x, params)

    # Weight folding / kron packing / casts happen ONCE here, not per call.
    encoder_f32 = make_encoder(params, compute_dtype=jnp.float32)
    encoder_bf16 = make_encoder(params, compute_dtype=jnp.bfloat16)

    # f32 compute path: tight check against the chained reference.
    out_f32 = jax.block_until_ready(encoder_f32(x))
    assert out_f32.shape == (batch, hidden_dim)
    assert jnp.allclose(out_f32, ref, atol=1e-4, rtol=1e-4)

    # bf16 compute path (fast path on v6e/v7x MXU): looser tolerance.
    out_bf16 = jax.block_until_ready(encoder_bf16(x))
    assert out_bf16.shape == (batch, hidden_dim)
    assert jnp.allclose(out_bf16, ref, atol=5e-2, rtol=5e-2)

    # Ragged batch: exercises the pad+slice path (B not a multiple of pack).
    x_ragged = x[:batch - 3]
    out_ragged = jax.block_until_ready(encoder_f32(x_ragged))
    assert out_ragged.shape == (batch - 3, hidden_dim)
    assert jnp.allclose(out_ragged, ref[:batch - 3], atol=1e-4, rtol=1e-4)

    # TODO(synk): the is_ckp=True path (torch.utils.checkpoint) only changes
    # backward-pass memory behavior; the forward math above is identical.
    print("KERNEL_OK")
</pallas_src>

<mosaic_0001>
module attributes {stable_mosaic.version = 11 : i64} {
  func.func @fused_encoder_kernel(%arg0: i32, %arg1: memref<128x128xf32, #tpu.memory_space<vmem>>, %arg2: memref<128x128xf32, #tpu.memory_space<vmem>>, %arg3: memref<1x128xf32, #tpu.memory_space<vmem>>, %arg4: memref<128x128xf32, #tpu.memory_space<vmem>>) attributes {dimension_semantics = [#tpu.dimension_semantics<parallel>], iteration_bounds = array<i64: 1>, scalar_prefetch = 0 : i64, scratch_operands = 0 : i64, tpu.core_type = #tpu.core_type<tc>, window_params = [{transform_indices = @transform_0, window_bounds = array<i64: 128, 128>}, {pipeline_mode = #tpu.pipeline_mode<synchronous>, transform_indices = @transform_1, window_bounds = array<i64: 128, 128>}, {pipeline_mode = #tpu.pipeline_mode<synchronous>, transform_indices = @transform_2, window_bounds = array<i64: 1, 128>}, {transform_indices = @transform_3, window_bounds = array<i64: 128, 128>}]} {
    %c0 = arith.constant 0 : index
    %c0_0 = arith.constant 0 : index
    %0 = vector.load %arg1[%c0, %c0_0] : memref<128x128xf32, #tpu.memory_space<vmem>>, vector<128x128xf32>
    %c0_1 = arith.constant 0 : index
    %c0_2 = arith.constant 0 : index
    %1 = vector.load %arg2[%c0_1, %c0_2] : memref<128x128xf32, #tpu.memory_space<vmem>>, vector<128x128xf32>
    %cst = arith.constant dense<0.000000e+00> : vector<128x128xf32>
    %2 = tpu.matmul %0, %1, %cst {dimension_numbers = #tpu.dot_dimension_numbers<[1], [0], [0], [1], [0, 0, 1, 1], [], []>} : vector<128x128xf32>, vector<128x128xf32>, vector<128x128xf32> -> vector<128x128xf32>
    %c0_3 = arith.constant 0 : index
    %c0_4 = arith.constant 0 : index
    %3 = vector.load %arg3[%c0_3, %c0_4] : memref<1x128xf32, #tpu.memory_space<vmem>>, vector<1x128xf32>
    %4 = vector.broadcast %3 : vector<1x128xf32> to vector<128x128xf32>
    %5 = arith.addf %2, %4 : vector<128x128xf32>
    %c0_5 = arith.constant 0 : index
    %c0_6 = arith.constant 0 : index
    %6 = vector.load %arg4[%c0_5, %c0_6] : memref<128x128xf32, #tpu.memory_space<vmem>>, vector<128x128xf32>
    tpu.vector_store %arg4[%c0_5, %c0_6], %5 {strides = array<i32>} : memref<128x128xf32, #tpu.memory_space<vmem>>, vector<128x128xf32>,
    return
  }
  func.func @transform_0(%arg0: i32) -> (i32, i32) {
    %c0_i32 = arith.constant 0 : i32
    %c0_i32_0 = arith.constant 0 : i32
    return %arg0, %c0_i32 : i32, i32
  }
  func.func @transform_1(%arg0: i32) -> (i32, i32) {
    %c0_i32 = arith.constant 0 : i32
    %c0_i32_0 = arith.constant 0 : i32
    %c0_i32_1 = arith.constant 0 : i32
    return %c0_i32, %c0_i32_0 : i32, i32
  }
  func.func @transform_2(%arg0: i32) -> (i32, i32) {
    %c0_i32 = arith.constant 0 : i32
    %c0_i32_0 = arith.constant 0 : i32
    %c0_i32_1 = arith.constant 0 : i32
    return %c0_i32, %c0_i32_0 : i32, i32
  }
  func.func @transform_3(%arg0: i32) -> (i32, i32) {
    %c0_i32 = arith.constant 0 : i32
    %c0_i32_0 = arith.constant 0 : i32
    return %arg0, %c0_i32 : i32, i32
  }
}

</mosaic_0001>

<bundles_post_ra>
// kernel: forward.1
= control target key start
LH: loop header
LB: loop body
LE: loop exit
PB: predicated region body
PF: predicated region fallthrough
CT: control target
= control target key end

     0   :  { %s506_s1 = inlined_call_operand.vmem [shape: f32[128,128], index: 1, kind: input, shape index: {}]   ;;  %s507_s0 = inlined_call_operand.vmem [shape: f32[128,128], index: 0, kind: input, shape index: {}]   ;;  %s508_s2 = inlined_call_operand.vmem [shape: f32[1,128], index: 2, kind: input, shape index: {}]   ;;  %s509_s3 = inlined_call_operand.vmem [shape: f32[128,128], index: 3, kind: output, shape index: {}]  }
   0x1   :  { %v45_v0 = vld [vmem:[%s506_s1 + $0x78] sm:$0xff]  ;;  %v44_v1 = vld [vmem:[%s506_s1 + $0x70] sm:$0xff]  ;;  %v43_v2 = vld [vmem:[%s506_s1 + $0x68] sm:$0xff] }
   0x2   :  { %251 = vmatprep.subr.mxu0 %v45_v0  ;;  %307 = vmatprep.subr.mxu1 %v45_v0  ;;  %v42_v3 = vld [vmem:[%s506_s1 + $0x60] sm:$0xff]  ;;  %v41_v4 = vld [vmem:[%s506_s1 + $0x58] sm:$0xff]  ;;  %v40_v5 = vld [vmem:[%s506_s1 + $0x50] sm:$0xff] }
   0x3   :  { %252 = vmatpush3.msra.mxu0 %v45_v0  ;;  %323 = vmatpush3.msra.mxu1 %v45_v0  ;;  %v39_v6 = vld [vmem:[%s506_s1 + $0x48] sm:$0xff]  ;;  %v38_v7 = vld [vmem:[%s506_s1 + $0x40] sm:$0xff]  ;;  %v37_v8 = vld [vmem:[%s506_s1 + $0x38] sm:$0xff] }
   0x4   :  { %253 = vmatprep.subr.mxu0 %v44_v1  ;;  %308 = vmatprep.subr.mxu1 %v44_v1  ;;  %v36_v9 = vld [vmem:[%s506_s1 + $0x30] sm:$0xff]  ;;  %v35_v10 = vld [vmem:[%s506_s1 + $0x28] sm:$0xff]  ;;  %v34_v11 = vld [vmem:[%s506_s1 + $0x20] sm:$0xff] }
   0x5   :  { %254 = vmatpush3.msra.mxu0 %v44_v1  ;;  %324 = vmatpush3.msra.mxu1 %v44_v1  ;;  %v33_v12 = vld [vmem:[%s506_s1 + $0x18] sm:$0xff]  ;;  %v32_v13 = vld [vmem:[%s506_s1 + $0x10] sm:$0xff]  ;;  %v31_v14 = vld [vmem:[%s506_s1 + $0x8] sm:$0xff] }
   0x6   :  { %255 = vmatprep.subr.mxu0 %v43_v2  ;;  %309 = vmatprep.subr.mxu1 %v43_v2  ;;  %v30_v15 = vld [vmem:[%s506_s1] sm:$0xff]  ;;  %v15_v18 = vld [vmem:[%s507_s0 + $0x8] sm:$0xff]  ;;  %v16_v20 = vld [vmem:[%s507_s0 + $0x10] sm:$0xff] }
   0x7   :  { %256 = vmatpush3.msra.mxu0 %v43_v2  ;;  %325 = vmatpush3.msra.mxu1 %v43_v2  ;;  %v14_v16 = vld [vmem:[%s507_s0] sm:$0xff]  ;;  %v23_v19 = vld [vmem:[%s507_s0 + $0x48] sm:$0xff]  ;;  %v24_v21 = vld [vmem:[%s507_s0 + $0x50] sm:$0xff] }
   0x8   :  { %257 = vmatprep.subr.mxu0 %v42_v3  ;;  %310 = vmatprep.subr.mxu1 %v42_v3  ;;  %v22_v17 = vld [vmem:[%s507_s0 + $0x40] sm:$0xff]  ;;  %v17_v22 = vld [vmem:[%s507_s0 + $0x18] sm:$0xff]  ;;  %v19_v26 = vld [vmem:[%s507_s0 + $0x28] sm:$0xff] }
   0x9   :  { %258 = vmatpush3.msra.mxu0 %v42_v3  ;;  %326 = vmatpush3.msra.mxu1 %v42_v3  ;;  %v25_v23 = vld [vmem:[%s507_s0 + $0x58] sm:$0xff]  ;;  %v18_v24 = vld [vmem:[%s507_s0 + $0x20] sm:$0xff]  ;;  %v27_v27 = vld [vmem:[%s507_s0 + $0x68] sm:$0xff] }
   0xa   :  { %259 = vmatprep.subr.mxu0 %v41_v4  ;;  %311 = vmatprep.subr.mxu1 %v41_v4  ;;  %v26_v25 = vld [vmem:[%s507_s0 + $0x60] sm:$0xff]  ;;  %v20_v28 = vld [vmem:[%s507_s0 + $0x30] sm:$0xff]  ;;  %v21_v30 = vld [vmem:[%s507_s0 + $0x38] sm:$0xff] }
   0xb   :  { %260 = vmatpush3.msra.mxu0 %v41_v4  ;;  %327 = vmatpush3.msra.mxu1 %v41_v4  ;;  %v28_v29 = vld [vmem:[%s507_s0 + $0x70] sm:$0xff]  ;;  %v29_v31 = vld [vmem:[%s507_s0 + $0x78] sm:$0xff]  ;;  %v218_v32 = vld [vmem:[%s508_s2] ss:$0 sm:$0xff] }
   0xc   :  { %261 = vmatprep.subr.mxu0 %v40_v5  ;;  %312 = vmatprep.subr.mxu1 %v40_v5 }
   0xd   :  { %262 = vmatpush3.msra.mxu0 %v40_v5  ;;  %328 = vmatpush3.msra.mxu1 %v40_v5 }
   0xe   :  { %263 = vmatprep.subr.mxu0 %v39_v6  ;;  %313 = vmatprep.subr.mxu1 %v39_v6 }
   0xf   :  { %264 = vmatpush3.msra.mxu0 %v39_v6  ;;  %329 = vmatpush3.msra.mxu1 %v39_v6 }
  0x10   :  { %265 = vmatprep.subr.mxu0 %v38_v7  ;;  %314 = vmatprep.subr.mxu1 %v38_v7 }
  0x11   :  { %266 = vmatpush3.msra.mxu0 %v38_v7  ;;  %330 = vmatpush3.msra.mxu1 %v38_v7 }
  0x12   :  { %267 = vmatprep.subr.mxu0 %v37_v8  ;;  %315 = vmatprep.subr.mxu1 %v37_v8 }
  0x13   :  { %268 = vmatpush3.msra.mxu0 %v37_v8  ;;  %331 = vmatpush3.msra.mxu1 %v37_v8 }
  0x14   :  { %269 = vmatprep.subr.mxu0 %v36_v9  ;;  %316 = vmatprep.subr.mxu1 %v36_v9 }
  0x15   :  { %270 = vmatpush3.msra.mxu0 %v36_v9  ;;  %332 = vmatpush3.msra.mxu1 %v36_v9 }
  0x16   :  { %271 = vmatprep.subr.mxu0 %v35_v10  ;;  %317 = vmatprep.subr.mxu1 %v35_v10 }
  0x17   :  { %272 = vmatpush3.msra.mxu0 %v35_v10  ;;  %333 = vmatpush3.msra.mxu1 %v35_v10 }
  0x18   :  { %273 = vmatprep.subr.mxu0 %v34_v11  ;;  %318 = vmatprep.subr.mxu1 %v34_v11 }
  0x19   :  { %274 = vmatpush3.msra.mxu0 %v34_v11  ;;  %334 = vmatpush3.msra.mxu1 %v34_v11 }
  0x1a   :  { %275 = vmatprep.subr.mxu0 %v33_v12  ;;  %319 = vmatprep.subr.mxu1 %v33_v12 }
  0x1b   :  { %276 = vmatpush3.msra.mxu0 %v33_v12  ;;  %335 = vmatpush3.msra.mxu1 %v33_v12 }
  0x1c   :  { %277 = vmatprep.subr.mxu0 %v32_v13  ;;  %320 = vmatprep.subr.mxu1 %v32_v13 }
  0x1d   :  { %278 = vmatpush3.msra.mxu0 %v32_v13  ;;  %336 = vmatpush3.msra.mxu1 %v32_v13 }
  0x1e   :  { %279 = vmatprep.subr.mxu0 %v31_v14  ;;  %321 = vmatprep.subr.mxu1 %v31_v14 }
  0x1f   :  { %280 = vmatpush3.msra.mxu0 %v31_v14  ;;  %337 = vmatpush3.msra.mxu1 %v31_v14 }
  0x20   :  { %281 = vmatprep.subr.mxu0 %v30_v15  ;;  %322 = vmatprep.subr.mxu1 %v30_v15 }
  0x21   :  { %282 = vmatpush3.msra.mxu0 %v30_v15  ;;  %338 = vmatpush3.msra.mxu1 %v30_v15 }
  0x22   :  { %283 = vmatprep.mubr.f32.mxu0 %v14_v16  ;;  %295 = vmatprep.mubr.f32.mxu1 %v22_v17 }
  0x23   :  { %284 = vmatmul.mubr.f32.vlgmr.msra.gmra.mxu0 %v15_v18  ;;  %296 = vmatmul.mubr.f32.vlgmr.msra.gmra.mxu1 %v23_v19 }
  0x24   :  { %286 = vmatprep.mubr.f32.mxu0 %v16_v20  ;;  %298 = vmatprep.mubr.f32.mxu1 %v24_v21 }
  0x27   :  { %287 = vmatmul.mubr.f32.gmra.mxu0 %v17_v22  ;;  %299 = vmatmul.mubr.f32.gmra.mxu1 %v25_v23 }
  0x28   :  { %289 = vmatprep.mubr.f32.mxu0 %v18_v24  ;;  %301 = vmatprep.mubr.f32.mxu1 %v26_v25 }
  0x2b   :  { %290 = vmatmul.mubr.f32.gmra.mxu0 %v19_v26  ;;  %302 = vmatmul.mubr.f32.gmra.mxu1 %v27_v27 }
  0x2c   :  { %292 = vmatprep.mubr.f32.mxu0 %v20_v28  ;;  %304 = vmatprep.mubr.f32.mxu1 %v28_v29 }
  0x2f   :  { %293 = vmatmul.mubr.f32.gmra.mxu0 %v21_v30  ;;  %305 = vmatmul.mubr.f32.gmra.mxu1 %v29_v31 }
  0xe3   :  { %v285_v33 = vpop.f32.mrf.mxu0  ;;  %v297_v34 = vpop.f32.mrf.mxu1 }
  0xe4   :  { %v125_v35 = vadd.f32 %v285_v33, %v218_v32  ;;  %v165_v36 = vadd.f32 %v297_v34, %v218_v32 }
  0xe5   :  { %v119_v37 = vpop.f32.mrf.mxu0  ;;  %v159_v38 = vpop.f32.mrf.mxu1 }
  0xe6   :  { %199 = vst [vmem:[%s509_s3 + $0x8] sm:$0xff] %v125_v35  ;;  %207 = vst [vmem:[%s509_s3 + $0x48] sm:$0xff] %v165_v36  ;;  %v120_v39 = vadd.f32 %v218_v32, %v119_v37  ;;  %v160_v40 = vadd.f32 %v218_v32, %v159_v38 }
  0xe7   :  { %v288_v41 = vpop.f32.mrf.mxu0  ;;  %v300_v42 = vpop.f32.mrf.mxu1 }
  0xe8   :  { %198 = vst [vmem:[%s509_s3] sm:$0xff] %v120_v39  ;;  %206 = vst [vmem:[%s509_s3 + $0x40] sm:$0xff] %v160_v40  ;;  %v135_v43 = vadd.f32 %v288_v41, %v218_v32  ;;  %v175_v44 = vadd.f32 %v300_v42, %v218_v32 }
  0xe9   :  { %v129_v45 = vpop.f32.mrf.mxu0  ;;  %v169_v46 = vpop.f32.mrf.mxu1 }
  0xea   :  { %201 = vst [vmem:[%s509_s3 + $0x18] sm:$0xff] %v135_v43  ;;  %209 = vst [vmem:[%s509_s3 + $0x58] sm:$0xff] %v175_v44  ;;  %v130_v47 = vadd.f32 %v218_v32, %v129_v45  ;;  %v170_v48 = vadd.f32 %v218_v32, %v169_v46 }
  0xeb   :  { %v291_v49 = vpop.f32.mrf.mxu0  ;;  %v303_v50 = vpop.f32.mrf.mxu1 }
  0xec   :  { %200 = vst [vmem:[%s509_s3 + $0x10] sm:$0xff] %v130_v47  ;;  %208 = vst [vmem:[%s509_s3 + $0x50] sm:$0xff] %v170_v48  ;;  %v145_v51 = vadd.f32 %v291_v49, %v218_v32  ;;  %v185_v52 = vadd.f32 %v303_v50, %v218_v32 }
  0xed   :  { %v139_v53 = vpop.f32.mrf.mxu0  ;;  %v179_v54 = vpop.f32.mrf.mxu1 }
  0xee   :  { %203 = vst [vmem:[%s509_s3 + $0x28] sm:$0xff] %v145_v51  ;;  %211 = vst [vmem:[%s509_s3 + $0x68] sm:$0xff] %v185_v52  ;;  %v140_v55 = vadd.f32 %v218_v32, %v139_v53  ;;  %v180_v56 = vadd.f32 %v218_v32, %v179_v54 }
  0xef   :  { %v294_v57 = vpop.f32.mrf.mxu0  ;;  %v306_v58 = vpop.f32.mrf.mxu1 }
  0xf0   :  { %202 = vst [vmem:[%s509_s3 + $0x20] sm:$0xff] %v140_v55  ;;  %210 = vst [vmem:[%s509_s3 + $0x60] sm:$0xff] %v180_v56  ;;  %v155_v59 = vadd.f32 %v294_v57, %v218_v32  ;;  %v195_v60 = vadd.f32 %v306_v58, %v218_v32 }
  0xf1   :  { %v149_v61 = vpop.f32.mrf.mxu0  ;;  %v189_v62 = vpop.f32.mrf.mxu1 }
  0xf2   :  { %205 = vst [vmem:[%s509_s3 + $0x38] sm:$0xff] %v155_v59  ;;  %213 = vst [vmem:[%s509_s3 + $0x78] sm:$0xff] %v195_v60  ;;  %v150_v63 = vadd.f32 %v218_v32, %v149_v61  ;;  %v190_v0 = vadd.f32 %v218_v32, %v189_v62 }
  0xf4   :  { %204 = vst [vmem:[%s509_s3 + $0x30] sm:$0xff] %v150_v63  ;;  %212 = vst [vmem:[%s509_s3 + $0x70] sm:$0xff] %v190_v0 }

</bundles_post_ra>
